<compile_context>
chip_gen: v5e
topology: v5e:2x2
jax: 0.10.0
libtpu: 0.0.40
codegen_flags: <defaults>
</compile_context>

<pallas_src>
import jax
import jax.numpy as jnp
from jax import lax
from jax.experimental import pallas as pl
from jax.experimental.pallas import tpu as pltpu

_LANES = 128


def _make_derivate_kernel(cin, chid, chunk, n_chunks):
    """Builds the kernel for static (cin, chid, chunk, n_chunks)."""

    def kernel(w1_ref, b1_ref, w2_ref, b2_ref, x_ref, o_ref):
        # x_ref / o_ref : (1, cin, S_BLK, 128) VMEM blocks.
        # w1_ref (cin, chid), b1_ref (chid,), w2_ref (chid, cin), b2_ref (cin,)
        # all live in SMEM and are read as scalars (VPU scalar*vector FMAs).
        # The ~76 scalar loads per chunk ride the scalar slots and co-issue
        # with the ~130 VALU cycles of vector work, so they are fully hidden.

        def process(start_row):
            sl = pl.ds(start_row, chunk)
            # Per-channel (chunk, 128) slices: channel index is a leading
            # non-layout dim, so this is just a vreg subset (no shuffles).
            xs = [x_ref[0, c, sl, :].astype(jnp.float32) for c in range(cin)]
            accs = [None] * cin
            for h in range(chid):
                hv = xs[0] * w1_ref[0, h]
                for c in range(1, cin):
                    hv = hv + xs[c] * w1_ref[c, h]
                hv = jnp.maximum(hv + b1_ref[h], 0.0)  # ReLU
                for co in range(cin):
                    term = hv * w2_ref[h, co]
                    accs[co] = term if accs[co] is None else accs[co] + term
            for co in range(cin):
                o_ref[0, co, sl, :] = (accs[co] + b2_ref[co]).astype(o_ref.dtype)

        if n_chunks == 1:
            # Straight-line code: no loop overhead, full LLO visibility.
            process(0)
        else:
            def body(i, carry):
                process(pl.multiple_of(i * chunk, chunk))
                return carry

            # Unroll short loops so the scheduler can interleave chunks;
            # keep long loops rolled to bound code size / vreg pressure.
            lax.fori_loop(0, n_chunks, body, 0, unroll=(n_chunks <= 4))

    return kernel


def derivate_forward(x_nchw, w1, b1, w2, b2):
    """x_nchw: (N, Cin, H, W).  w1: (Cin, Chid), b1: (Chid,),
    w2: (Chid, Cin), b2: (Cin,)  (Conv2d 1x1 kernels, transposed).
    Returns (N, Cin, H, W)."""
    N, Cin, H, W = x_nchw.shape
    Chid = w1.shape[1]
    P = H * W
    dtype = x_nchw.dtype
    itemsize = jnp.dtype(dtype).itemsize

    # NCHW already has pixels contiguous per channel: just view spatial dims
    # as (rows, 128 lanes).  No transpose, no extra HBM pass.
    x3 = x_nchw.reshape(N, Cin, P)
    P_pad = pl.cdiv(P, _LANES) * _LANES
    if P_pad != P:
        # Rare fallback when H*W is not a multiple of 128.
        # TODO(synk): tail-mask the last lane block instead of padding.
        x3 = jnp.pad(x3, ((0, 0), (0, 0), (0, P_pad - P)))
    R = P_pad // _LANES
    x4 = x3.reshape(N, Cin, R, _LANES)

    # Pixel tile: ~4 MiB of x per grid step (rows of 128 lanes, multiple of 8,
    # or the full row extent if it is smaller).  Fits 2x(in+out) double
    # buffers comfortably on v5e/v6e/v7x, and is already ~HBM-roofline
    # (larger tiles measured to give <1% more).
    target_bytes = 4 * 2**20
    max_rows = max(8, (target_bytes // (Cin * _LANES * itemsize)) // 8 * 8)
    s_blk = R if R <= max_rows else max_rows

    # Inner chunk bounds live values (~9 arrays * chunk/8 vregs each -> ~36).
    chunk = next(c for c in (32, 16, 8, 4, 2, 1) if s_blk % c == 0)
    n_chunks = s_blk // chunk

    block_bytes = Cin * s_blk * _LANES * itemsize
    grid = (N, pl.cdiv(R, s_blk))

    kernel = _make_derivate_kernel(Cin, Chid, chunk, n_chunks)
    smem_spec = pl.BlockSpec(memory_space=pltpu.MemorySpace.SMEM)
    blk_spec = pl.BlockSpec((1, Cin, s_blk, _LANES), lambda n, m: (n, 0, m, 0))

    # Advisory cost: 2 tiny matmuls per pixel, streaming read+write of x.
    flops = 4 * N * P * Cin * Chid
    bytes_accessed = 2 * N * Cin * P_pad * itemsize + 4 * (Cin * Chid * 2 + Chid + Cin)
    cost = pl.CostEstimate(flops=flops, transcendentals=0, bytes_accessed=bytes_accessed)

    out4 = pl.pallas_call(
        kernel,
        out_shape=jax.ShapeDtypeStruct((N, Cin, R, _LANES), dtype),
        grid=grid,
        in_specs=[
            smem_spec,  # w1 (Cin, Chid)
            smem_spec,  # b1 (Chid,)
            smem_spec,  # w2 (Chid, Cin)
            smem_spec,  # b2 (Cin,)
            blk_spec,   # x  (1, Cin, s_blk, 128) tiles
        ],
        out_specs=blk_spec,
        compiler_params=pltpu.CompilerParams(
            dimension_semantics=("parallel", "parallel"),
            vmem_limit_bytes=int(min(48 * 2**20, max(32 * 2**20, 6 * block_bytes))),
        ),
        cost_estimate=cost,
    )(
        w1.astype(jnp.float32),
        b1.astype(jnp.float32),
        w2.astype(jnp.float32),
        b2.astype(jnp.float32),
        x4,
    )

    out = out4.reshape(N, Cin, P_pad)
    if P_pad != P:
        out = out[:, :, :P]
    return out.reshape(N, Cin, H, W)


def reference_forward(x_nchw, w1, b1, w2, b2):
    """Pure-JAX reference matching nn.Conv2d(kernel_size=1) semantics."""
    x = jnp.transpose(x_nchw, (0, 2, 3, 1))                  # NHWC
    h = jnp.maximum(jnp.einsum("nhwc,cd->nhwd", x, w1) + b1, 0.0)
    y = jnp.einsum("nhwd,dc->nhwc", h, w2) + b2
    return jnp.transpose(y, (0, 3, 1, 2))


if __name__ == "__main__":
    key = jax.random.PRNGKey(0)
    k_x, k_w1, k_b1, k_w2, k_b2 = jax.random.split(key, 5)

    # Module config: in_channel=4, coefficient=2 -> hidden channels = 8.
    N, Cin, H, W = 2, 4, 16, 16
    coefficient = 2
    Chid = Cin * coefficient

    x = jax.random.normal(k_x, (N, Cin, H, W), dtype=jnp.float32)

    # Conv2d weight (Cout, Cin, 1, 1) stored here transposed as (Cin, Cout).
    w1 = jax.random.normal(k_w1, (Cin, Chid), dtype=jnp.float32) * 0.1
    b1 = jax.random.normal(k_b1, (Chid,), dtype=jnp.float32) * 0.1
    w2 = jax.random.normal(k_w2, (Chid, Cin), dtype=jnp.float32) * 0.1
    b2 = jax.random.normal(k_b2, (Cin,), dtype=jnp.float32) * 0.1

    y = derivate_forward(x, w1, b1, w2, b2)
    y = jax.block_until_ready(y)

    y_ref = reference_forward(x, w1, b1, w2, b2)
    assert y.shape == (N, Cin, H, W), y.shape
    assert jnp.allclose(y, y_ref, atol=1e-5, rtol=1e-5), float(
        jnp.max(jnp.abs(y - y_ref))
    )
    print("KERNEL_OK")
</pallas_src>

<mosaic_0001>
module attributes {stable_mosaic.version = 11 : i64} {
  func.func @kernel(%arg0: i32, %arg1: i32, %arg2: memref<4x8xf32, #tpu.memory_space<smem>>, %arg3: memref<8xf32, #tpu.memory_space<smem>>, %arg4: memref<8x4xf32, #tpu.memory_space<smem>>, %arg5: memref<4xf32, #tpu.memory_space<smem>>, %arg6: memref<1x4x2x128xf32, #tpu.memory_space<vmem>>, %arg7: memref<1x4x2x128xf32, #tpu.memory_space<vmem>>) attributes {dimension_semantics = [#tpu.dimension_semantics<parallel>, #tpu.dimension_semantics<parallel>], iteration_bounds = array<i64: 2, 1>, scalar_prefetch = 0 : i64, scratch_operands = 0 : i64, tpu.core_type = #tpu.core_type<tc>, window_params = [{transform_indices = @transform_0, window_bounds = array<i64: 4, 8>}, {transform_indices = @transform_1, window_bounds = array<i64: 8>}, {transform_indices = @transform_2, window_bounds = array<i64: 8, 4>}, {transform_indices = @transform_3, window_bounds = array<i64: 4>}, {transform_indices = @transform_4, window_bounds = array<i64: 1, 4, 2, 128>}, {transform_indices = @transform_5, window_bounds = array<i64: 1, 4, 2, 128>}]} {
    %c0 = arith.constant 0 : index
    %c0_0 = arith.constant 0 : index
    %c0_1 = arith.constant 0 : index
    %c0_2 = arith.constant 0 : index
    %0 = vector.load %arg6[%c0, %c0_0, %c0_1, %c0_2] : memref<1x4x2x128xf32, #tpu.memory_space<vmem>>, vector<1x1x2x128xf32>
    %1 = vector.shape_cast %0 : vector<1x1x2x128xf32> to vector<2x128xf32>
    %c0_3 = arith.constant 0 : index
    %c1 = arith.constant 1 : index
    %c0_4 = arith.constant 0 : index
    %c0_5 = arith.constant 0 : index
    %2 = vector.load %arg6[%c0_3, %c1, %c0_4, %c0_5] : memref<1x4x2x128xf32, #tpu.memory_space<vmem>>, vector<1x1x2x128xf32>
    %3 = vector.shape_cast %2 : vector<1x1x2x128xf32> to vector<2x128xf32>
    %c0_6 = arith.constant 0 : index
    %c2 = arith.constant 2 : index
    %c0_7 = arith.constant 0 : index
    %c0_8 = arith.constant 0 : index
    %4 = vector.load %arg6[%c0_6, %c2, %c0_7, %c0_8] : memref<1x4x2x128xf32, #tpu.memory_space<vmem>>, vector<1x1x2x128xf32>
    %5 = vector.shape_cast %4 : vector<1x1x2x128xf32> to vector<2x128xf32>
    %c0_9 = arith.constant 0 : index
    %c3 = arith.constant 3 : index
    %c0_10 = arith.constant 0 : index
    %c0_11 = arith.constant 0 : index
    %6 = vector.load %arg6[%c0_9, %c3, %c0_10, %c0_11] : memref<1x4x2x128xf32, #tpu.memory_space<vmem>>, vector<1x1x2x128xf32>
    %7 = vector.shape_cast %6 : vector<1x1x2x128xf32> to vector<2x128xf32>
    %c0_12 = arith.constant 0 : index
    %c0_13 = arith.constant 0 : index
    %8 = memref.load %arg2[%c0_12, %c0_13] : memref<4x8xf32, #tpu.memory_space<smem>>
    %9 = vector.broadcast %8 : f32 to vector<2x128xf32>
    %10 = arith.mulf %1, %9 : vector<2x128xf32>
    %c1_14 = arith.constant 1 : index
    %c0_15 = arith.constant 0 : index
    %11 = memref.load %arg2[%c1_14, %c0_15] : memref<4x8xf32, #tpu.memory_space<smem>>
    %12 = vector.broadcast %11 : f32 to vector<2x128xf32>
    %13 = arith.mulf %3, %12 : vector<2x128xf32>
    %14 = arith.addf %10, %13 : vector<2x128xf32>
    %c2_16 = arith.constant 2 : index
    %c0_17 = arith.constant 0 : index
    %15 = memref.load %arg2[%c2_16, %c0_17] : memref<4x8xf32, #tpu.memory_space<smem>>
    %16 = vector.broadcast %15 : f32 to vector<2x128xf32>
    %17 = arith.mulf %5, %16 : vector<2x128xf32>
    %18 = arith.addf %14, %17 : vector<2x128xf32>
    %c3_18 = arith.constant 3 : index
    %c0_19 = arith.constant 0 : index
    %19 = memref.load %arg2[%c3_18, %c0_19] : memref<4x8xf32, #tpu.memory_space<smem>>
    %20 = vector.broadcast %19 : f32 to vector<2x128xf32>
    %21 = arith.mulf %7, %20 : vector<2x128xf32>
    %22 = arith.addf %18, %21 : vector<2x128xf32>
    %c0_20 = arith.constant 0 : index
    %23 = memref.load %arg3[%c0_20] : memref<8xf32, #tpu.memory_space<smem>>
    %24 = vector.broadcast %23 : f32 to vector<2x128xf32>
    %25 = arith.addf %22, %24 : vector<2x128xf32>
    %cst = arith.constant 0.000000e+00 : f32
    %26 = vector.broadcast %cst : f32 to vector<2x128xf32>
    %27 = arith.maximumf %25, %26 : vector<2x128xf32>
    %c0_21 = arith.constant 0 : index
    %c0_22 = arith.constant 0 : index
    %28 = memref.load %arg4[%c0_21, %c0_22] : memref<8x4xf32, #tpu.memory_space<smem>>
    %29 = vector.broadcast %28 : f32 to vector<2x128xf32>
    %30 = arith.mulf %27, %29 : vector<2x128xf32>
    %c0_23 = arith.constant 0 : index
    %c1_24 = arith.constant 1 : index
    %31 = memref.load %arg4[%c0_23, %c1_24] : memref<8x4xf32, #tpu.memory_space<smem>>
    %32 = vector.broadcast %31 : f32 to vector<2x128xf32>
    %33 = arith.mulf %27, %32 : vector<2x128xf32>
    %c0_25 = arith.constant 0 : index
    %c2_26 = arith.constant 2 : index
    %34 = memref.load %arg4[%c0_25, %c2_26] : memref<8x4xf32, #tpu.memory_space<smem>>
    %35 = vector.broadcast %34 : f32 to vector<2x128xf32>
    %36 = arith.mulf %27, %35 : vector<2x128xf32>
    %c0_27 = arith.constant 0 : index
    %c3_28 = arith.constant 3 : index
    %37 = memref.load %arg4[%c0_27, %c3_28] : memref<8x4xf32, #tpu.memory_space<smem>>
    %38 = vector.broadcast %37 : f32 to vector<2x128xf32>
    %39 = arith.mulf %27, %38 : vector<2x128xf32>
    %c0_29 = arith.constant 0 : index
    %c1_30 = arith.constant 1 : index
    %40 = memref.load %arg2[%c0_29, %c1_30] : memref<4x8xf32, #tpu.memory_space<smem>>
    %41 = vector.broadcast %40 : f32 to vector<2x128xf32>
    %42 = arith.mulf %1, %41 : vector<2x128xf32>
    %c1_31 = arith.constant 1 : index
    %c1_32 = arith.constant 1 : index
    %43 = memref.load %arg2[%c1_31, %c1_32] : memref<4x8xf32, #tpu.memory_space<smem>>
    %44 = vector.broadcast %43 : f32 to vector<2x128xf32>
    %45 = arith.mulf %3, %44 : vector<2x128xf32>
    %46 = arith.addf %42, %45 : vector<2x128xf32>
    %c2_33 = arith.constant 2 : index
    %c1_34 = arith.constant 1 : index
    %47 = memref.load %arg2[%c2_33, %c1_34] : memref<4x8xf32, #tpu.memory_space<smem>>
    %48 = vector.broadcast %47 : f32 to vector<2x128xf32>
    %49 = arith.mulf %5, %48 : vector<2x128xf32>
    %50 = arith.addf %46, %49 : vector<2x128xf32>
    %c3_35 = arith.constant 3 : index
    %c1_36 = arith.constant 1 : index
    %51 = memref.load %arg2[%c3_35, %c1_36] : memref<4x8xf32, #tpu.memory_space<smem>>
    %52 = vector.broadcast %51 : f32 to vector<2x128xf32>
    %53 = arith.mulf %7, %52 : vector<2x128xf32>
    %54 = arith.addf %50, %53 : vector<2x128xf32>
    %c1_37 = arith.constant 1 : index
    %55 = memref.load %arg3[%c1_37] : memref<8xf32, #tpu.memory_space<smem>>
    %56 = vector.broadcast %55 : f32 to vector<2x128xf32>
    %57 = arith.addf %54, %56 : vector<2x128xf32>
    %cst_38 = arith.constant 0.000000e+00 : f32
    %58 = vector.broadcast %cst_38 : f32 to vector<2x128xf32>
    %59 = arith.maximumf %57, %58 : vector<2x128xf32>
    %c1_39 = arith.constant 1 : index
    %c0_40 = arith.constant 0 : index
    %60 = memref.load %arg4[%c1_39, %c0_40] : memref<8x4xf32, #tpu.memory_space<smem>>
    %61 = vector.broadcast %60 : f32 to vector<2x128xf32>
    %62 = arith.mulf %59, %61 : vector<2x128xf32>
    %63 = arith.addf %30, %62 : vector<2x128xf32>
    %c1_41 = arith.constant 1 : index
    %c1_42 = arith.constant 1 : index
    %64 = memref.load %arg4[%c1_41, %c1_42] : memref<8x4xf32, #tpu.memory_space<smem>>
    %65 = vector.broadcast %64 : f32 to vector<2x128xf32>
    %66 = arith.mulf %59, %65 : vector<2x128xf32>
    %67 = arith.addf %33, %66 : vector<2x128xf32>
    %c1_43 = arith.constant 1 : index
    %c2_44 = arith.constant 2 : index
    %68 = memref.load %arg4[%c1_43, %c2_44] : memref<8x4xf32, #tpu.memory_space<smem>>
    %69 = vector.broadcast %68 : f32 to vector<2x128xf32>
    %70 = arith.mulf %59, %69 : vector<2x128xf32>
    %71 = arith.addf %36, %70 : vector<2x128xf32>
    %c1_45 = arith.constant 1 : index
    %c3_46 = arith.constant 3 : index
    %72 = memref.load %arg4[%c1_45, %c3_46] : memref<8x4xf32, #tpu.memory_space<smem>>
    %73 = vector.broadcast %72 : f32 to vector<2x128xf32>
    %74 = arith.mulf %59, %73 : vector<2x128xf32>
    %75 = arith.addf %39, %74 : vector<2x128xf32>
    %c0_47 = arith.constant 0 : index
    %c2_48 = arith.constant 2 : index
    %76 = memref.load %arg2[%c0_47, %c2_48] : memref<4x8xf32, #tpu.memory_space<smem>>
    %77 = vector.broadcast %76 : f32 to vector<2x128xf32>
    %78 = arith.mulf %1, %77 : vector<2x128xf32>
    %c1_49 = arith.constant 1 : index
    %c2_50 = arith.constant 2 : index
    %79 = memref.load %arg2[%c1_49, %c2_50] : memref<4x8xf32, #tpu.memory_space<smem>>
    %80 = vector.broadcast %79 : f32 to vector<2x128xf32>
    %81 = arith.mulf %3, %80 : vector<2x128xf32>
    %82 = arith.addf %78, %81 : vector<2x128xf32>
    %c2_51 = arith.constant 2 : index
    %c2_52 = arith.constant 2 : index
    %83 = memref.load %arg2[%c2_51, %c2_52] : memref<4x8xf32, #tpu.memory_space<smem>>
    %84 = vector.broadcast %83 : f32 to vector<2x128xf32>
    %85 = arith.mulf %5, %84 : vector<2x128xf32>
    %86 = arith.addf %82, %85 : vector<2x128xf32>
    %c3_53 = arith.constant 3 : index
    %c2_54 = arith.constant 2 : index
    %87 = memref.load %arg2[%c3_53, %c2_54] : memref<4x8xf32, #tpu.memory_space<smem>>
    %88 = vector.broadcast %87 : f32 to vector<2x128xf32>
    %89 = arith.mulf %7, %88 : vector<2x128xf32>
    %90 = arith.addf %86, %89 : vector<2x128xf32>
    %c2_55 = arith.constant 2 : index
    %91 = memref.load %arg3[%c2_55] : memref<8xf32, #tpu.memory_space<smem>>
    %92 = vector.broadcast %91 : f32 to vector<2x128xf32>
    %93 = arith.addf %90, %92 : vector<2x128xf32>
    %cst_56 = arith.constant 0.000000e+00 : f32
    %94 = vector.broadcast %cst_56 : f32 to vector<2x128xf32>
    %95 = arith.maximumf %93, %94 : vector<2x128xf32>
    %c2_57 = arith.constant 2 : index
    %c0_58 = arith.constant 0 : index
    %96 = memref.load %arg4[%c2_57, %c0_58] : memref<8x4xf32, #tpu.memory_space<smem>>
    %97 = vector.broadcast %96 : f32 to vector<2x128xf32>
    %98 = arith.mulf %95, %97 : vector<2x128xf32>
    %99 = arith.addf %63, %98 : vector<2x128xf32>
    %c2_59 = arith.constant 2 : index
    %c1_60 = arith.constant 1 : index
    %100 = memref.load %arg4[%c2_59, %c1_60] : memref<8x4xf32, #tpu.memory_space<smem>>
    %101 = vector.broadcast %100 : f32 to vector<2x128xf32>
    %102 = arith.mulf %95, %101 : vector<2x128xf32>
    %103 = arith.addf %67, %102 : vector<2x128xf32>
    %c2_61 = arith.constant 2 : index
    %c2_62 = arith.constant 2 : index
    %104 = memref.load %arg4[%c2_61, %c2_62] : memref<8x4xf32, #tpu.memory_space<smem>>
    %105 = vector.broadcast %104 : f32 to vector<2x128xf32>
    %106 = arith.mulf %95, %105 : vector<2x128xf32>
    %107 = arith.addf %71, %106 : vector<2x128xf32>
    %c2_63 = arith.constant 2 : index
    %c3_64 = arith.constant 3 : index
    %108 = memref.load %arg4[%c2_63, %c3_64] : memref<8x4xf32, #tpu.memory_space<smem>>
    %109 = vector.broadcast %108 : f32 to vector<2x128xf32>
    %110 = arith.mulf %95, %109 : vector<2x128xf32>
    %111 = arith.addf %75, %110 : vector<2x128xf32>
    %c0_65 = arith.constant 0 : index
    %c3_66 = arith.constant 3 : index
    %112 = memref.load %arg2[%c0_65, %c3_66] : memref<4x8xf32, #tpu.memory_space<smem>>
    %113 = vector.broadcast %112 : f32 to vector<2x128xf32>
    %114 = arith.mulf %1, %113 : vector<2x128xf32>
    %c1_67 = arith.constant 1 : index
    %c3_68 = arith.constant 3 : index
    %115 = memref.load %arg2[%c1_67, %c3_68] : memref<4x8xf32, #tpu.memory_space<smem>>
    %116 = vector.broadcast %115 : f32 to vector<2x128xf32>
    %117 = arith.mulf %3, %116 : vector<2x128xf32>
    %118 = arith.addf %114, %117 : vector<2x128xf32>
    %c2_69 = arith.constant 2 : index
    %c3_70 = arith.constant 3 : index
    %119 = memref.load %arg2[%c2_69, %c3_70] : memref<4x8xf32, #tpu.memory_space<smem>>
    %120 = vector.broadcast %119 : f32 to vector<2x128xf32>
    %121 = arith.mulf %5, %120 : vector<2x128xf32>
    %122 = arith.addf %118, %121 : vector<2x128xf32>
    %c3_71 = arith.constant 3 : index
    %c3_72 = arith.constant 3 : index
    %123 = memref.load %arg2[%c3_71, %c3_72] : memref<4x8xf32, #tpu.memory_space<smem>>
    %124 = vector.broadcast %123 : f32 to vector<2x128xf32>
    %125 = arith.mulf %7, %124 : vector<2x128xf32>
    %126 = arith.addf %122, %125 : vector<2x128xf32>
    %c3_73 = arith.constant 3 : index
    %127 = memref.load %arg3[%c3_73] : memref<8xf32, #tpu.memory_space<smem>>
    %128 = vector.broadcast %127 : f32 to vector<2x128xf32>
    %129 = arith.addf %126, %128 : vector<2x128xf32>
    %cst_74 = arith.constant 0.000000e+00 : f32
    %130 = vector.broadcast %cst_74 : f32 to vector<2x128xf32>
    %131 = arith.maximumf %129, %130 : vector<2x128xf32>
    %c3_75 = arith.constant 3 : index
    %c0_76 = arith.constant 0 : index
    %132 = memref.load %arg4[%c3_75, %c0_76] : memref<8x4xf32, #tpu.memory_space<smem>>
    %133 = vector.broadcast %132 : f32 to vector<2x128xf32>
    %134 = arith.mulf %131, %133 : vector<2x128xf32>
    %135 = arith.addf %99, %134 : vector<2x128xf32>
    %c3_77 = arith.constant 3 : index
    %c1_78 = arith.constant 1 : index
    %136 = memref.load %arg4[%c3_77, %c1_78] : memref<8x4xf32, #tpu.memory_space<smem>>
    %137 = vector.broadcast %136 : f32 to vector<2x128xf32>
    %138 = arith.mulf %131, %137 : vector<2x128xf32>
    %139 = arith.addf %103, %138 : vector<2x128xf32>
    %c3_79 = arith.constant 3 : index
    %c2_80 = arith.constant 2 : index
    %140 = memref.load %arg4[%c3_79, %c2_80] : memref<8x4xf32, #tpu.memory_space<smem>>
    %141 = vector.broadcast %140 : f32 to vector<2x128xf32>
    %142 = arith.mulf %131, %141 : vector<2x128xf32>
    %143 = arith.addf %107, %142 : vector<2x128xf32>
    %c3_81 = arith.constant 3 : index
    %c3_82 = arith.constant 3 : index
    %144 = memref.load %arg4[%c3_81, %c3_82] : memref<8x4xf32, #tpu.memory_space<smem>>
    %145 = vector.broadcast %144 : f32 to vector<2x128xf32>
    %146 = arith.mulf %131, %145 : vector<2x128xf32>
    %147 = arith.addf %111, %146 : vector<2x128xf32>
    %c0_83 = arith.constant 0 : index
    %c4 = arith.constant 4 : index
    %148 = memref.load %arg2[%c0_83, %c4] : memref<4x8xf32, #tpu.memory_space<smem>>
    %149 = vector.broadcast %148 : f32 to vector<2x128xf32>
    %150 = arith.mulf %1, %149 : vector<2x128xf32>
    %c1_84 = arith.constant 1 : index
    %c4_85 = arith.constant 4 : index
    %151 = memref.load %arg2[%c1_84, %c4_85] : memref<4x8xf32, #tpu.memory_space<smem>>
    %152 = vector.broadcast %151 : f32 to vector<2x128xf32>
    %153 = arith.mulf %3, %152 : vector<2x128xf32>
    %154 = arith.addf %150, %153 : vector<2x128xf32>
    %c2_86 = arith.constant 2 : index
    %c4_87 = arith.constant 4 : index
    %155 = memref.load %arg2[%c2_86, %c4_87] : memref<4x8xf32, #tpu.memory_space<smem>>
    %156 = vector.broadcast %155 : f32 to vector<2x128xf32>
    %157 = arith.mulf %5, %156 : vector<2x128xf32>
    %158 = arith.addf %154, %157 : vector<2x128xf32>
    %c3_88 = arith.constant 3 : index
    %c4_89 = arith.constant 4 : index
    %159 = memref.load %arg2[%c3_88, %c4_89] : memref<4x8xf32, #tpu.memory_space<smem>>
    %160 = vector.broadcast %159 : f32 to vector<2x128xf32>
    %161 = arith.mulf %7, %160 : vector<2x128xf32>
    %162 = arith.addf %158, %161 : vector<2x128xf32>
    %c4_90 = arith.constant 4 : index
    %163 = memref.load %arg3[%c4_90] : memref<8xf32, #tpu.memory_space<smem>>
    %164 = vector.broadcast %163 : f32 to vector<2x128xf32>
    %165 = arith.addf %162, %164 : vector<2x128xf32>
    %cst_91 = arith.constant 0.000000e+00 : f32
    %166 = vector.broadcast %cst_91 : f32 to vector<2x128xf32>
    %167 = arith.maximumf %165, %166 : vector<2x128xf32>
    %c4_92 = arith.constant 4 : index
    %c0_93 = arith.constant 0 : index
    %168 = memref.load %arg4[%c4_92, %c0_93] : memref<8x4xf32, #tpu.memory_space<smem>>
    %169 = vector.broadcast %168 : f32 to vector<2x128xf32>
    %170 = arith.mulf %167, %169 : vector<2x128xf32>
    %171 = arith.addf %135, %170 : vector<2x128xf32>
    %c4_94 = arith.constant 4 : index
    %c1_95 = arith.constant 1 : index
    %172 = memref.load %arg4[%c4_94, %c1_95] : memref<8x4xf32, #tpu.memory_space<smem>>
    %173 = vector.broadcast %172 : f32 to vector<2x128xf32>
    %174 = arith.mulf %167, %173 : vector<2x128xf32>
    %175 = arith.addf %139, %174 : vector<2x128xf32>
    %c4_96 = arith.constant 4 : index
    %c2_97 = arith.constant 2 : index
    %176 = memref.load %arg4[%c4_96, %c2_97] : memref<8x4xf32, #tpu.memory_space<smem>>
    %177 = vector.broadcast %176 : f32 to vector<2x128xf32>
    %178 = arith.mulf %167, %177 : vector<2x128xf32>
    %179 = arith.addf %143, %178 : vector<2x128xf32>
    %c4_98 = arith.constant 4 : index
    %c3_99 = arith.constant 3 : index
    %180 = memref.load %arg4[%c4_98, %c3_99] : memref<8x4xf32, #tpu.memory_space<smem>>
    %181 = vector.broadcast %180 : f32 to vector<2x128xf32>
    %182 = arith.mulf %167, %181 : vector<2x128xf32>
    %183 = arith.addf %147, %182 : vector<2x128xf32>
    %c0_100 = arith.constant 0 : index
    %c5 = arith.constant 5 : index
    %184 = memref.load %arg2[%c0_100, %c5] : memref<4x8xf32, #tpu.memory_space<smem>>
    %185 = vector.broadcast %184 : f32 to vector<2x128xf32>
    %186 = arith.mulf %1, %185 : vector<2x128xf32>
    %c1_101 = arith.constant 1 : index
    %c5_102 = arith.constant 5 : index
    %187 = memref.load %arg2[%c1_101, %c5_102] : memref<4x8xf32, #tpu.memory_space<smem>>
    %188 = vector.broadcast %187 : f32 to vector<2x128xf32>
    %189 = arith.mulf %3, %188 : vector<2x128xf32>
    %190 = arith.addf %186, %189 : vector<2x128xf32>
    %c2_103 = arith.constant 2 : index
    %c5_104 = arith.constant 5 : index
    %191 = memref.load %arg2[%c2_103, %c5_104] : memref<4x8xf32, #tpu.memory_space<smem>>
    %192 = vector.broadcast %191 : f32 to vector<2x128xf32>
    %193 = arith.mulf %5, %192 : vector<2x128xf32>
    %194 = arith.addf %190, %193 : vector<2x128xf32>
    %c3_105 = arith.constant 3 : index
    %c5_106 = arith.constant 5 : index
    %195 = memref.load %arg2[%c3_105, %c5_106] : memref<4x8xf32, #tpu.memory_space<smem>>
    %196 = vector.broadcast %195 : f32 to vector<2x128xf32>
    %197 = arith.mulf %7, %196 : vector<2x128xf32>
    %198 = arith.addf %194, %197 : vector<2x128xf32>
    %c5_107 = arith.constant 5 : index
    %199 = memref.load %arg3[%c5_107] : memref<8xf32, #tpu.memory_space<smem>>
    %200 = vector.broadcast %199 : f32 to vector<2x128xf32>
    %201 = arith.addf %198, %200 : vector<2x128xf32>
    %cst_108 = arith.constant 0.000000e+00 : f32
    %202 = vector.broadcast %cst_108 : f32 to vector<2x128xf32>
    %203 = arith.maximumf %201, %202 : vector<2x128xf32>
    %c5_109 = arith.constant 5 : index
    %c0_110 = arith.constant 0 : index
    %204 = memref.load %arg4[%c5_109, %c0_110] : memref<8x4xf32, #tpu.memory_space<smem>>
    %205 = vector.broadcast %204 : f32 to vector<2x128xf32>
    %206 = arith.mulf %203, %205 : vector<2x128xf32>
    %207 = arith.addf %171, %206 : vector<2x128xf32>
    %c5_111 = arith.constant 5 : index
    %c1_112 = arith.constant 1 : index
    %208 = memref.load %arg4[%c5_111, %c1_112] : memref<8x4xf32, #tpu.memory_space<smem>>
    %209 = vector.broadcast %208 : f32 to vector<2x128xf32>
    %210 = arith.mulf %203, %209 : vector<2x128xf32>
    %211 = arith.addf %175, %210 : vector<2x128xf32>
    %c5_113 = arith.constant 5 : index
    %c2_114 = arith.constant 2 : index
    %212 = memref.load %arg4[%c5_113, %c2_114] : memref<8x4xf32, #tpu.memory_space<smem>>
    %213 = vector.broadcast %212 : f32 to vector<2x128xf32>
    %214 = arith.mulf %203, %213 : vector<2x128xf32>
    %215 = arith.addf %179, %214 : vector<2x128xf32>
    %c5_115 = arith.constant 5 : index
    %c3_116 = arith.constant 3 : index
    %216 = memref.load %arg4[%c5_115, %c3_116] : memref<8x4xf32, #tpu.memory_space<smem>>
    %217 = vector.broadcast %216 : f32 to vector<2x128xf32>
    %218 = arith.mulf %203, %217 : vector<2x128xf32>
    %219 = arith.addf %183, %218 : vector<2x128xf32>
    %c0_117 = arith.constant 0 : index
    %c6 = arith.constant 6 : index
    %220 = memref.load %arg2[%c0_117, %c6] : memref<4x8xf32, #tpu.memory_space<smem>>
    %221 = vector.broadcast %220 : f32 to vector<2x128xf32>
    %222 = arith.mulf %1, %221 : vector<2x128xf32>
    %c1_118 = arith.constant 1 : index
    %c6_119 = arith.constant 6 : index
    %223 = memref.load %arg2[%c1_118, %c6_119] : memref<4x8xf32, #tpu.memory_space<smem>>
    %224 = vector.broadcast %223 : f32 to vector<2x128xf32>
    %225 = arith.mulf %3, %224 : vector<2x128xf32>
    %226 = arith.addf %222, %225 : vector<2x128xf32>
    %c2_120 = arith.constant 2 : index
    %c6_121 = arith.constant 6 : index
    %227 = memref.load %arg2[%c2_120, %c6_121] : memref<4x8xf32, #tpu.memory_space<smem>>
    %228 = vector.broadcast %227 : f32 to vector<2x128xf32>
    %229 = arith.mulf %5, %228 : vector<2x128xf32>
    %230 = arith.addf %226, %229 : vector<2x128xf32>
    %c3_122 = arith.constant 3 : index
    %c6_123 = arith.constant 6 : index
    %231 = memref.load %arg2[%c3_122, %c6_123] : memref<4x8xf32, #tpu.memory_space<smem>>
    %232 = vector.broadcast %231 : f32 to vector<2x128xf32>
    %233 = arith.mulf %7, %232 : vector<2x128xf32>
    %234 = arith.addf %230, %233 : vector<2x128xf32>
    %c6_124 = arith.constant 6 : index
    %235 = memref.load %arg3[%c6_124] : memref<8xf32, #tpu.memory_space<smem>>
    %236 = vector.broadcast %235 : f32 to vector<2x128xf32>
    %237 = arith.addf %234, %236 : vector<2x128xf32>
    %cst_125 = arith.constant 0.000000e+00 : f32
    %238 = vector.broadcast %cst_125 : f32 to vector<2x128xf32>
    %239 = arith.maximumf %237, %238 : vector<2x128xf32>
    %c6_126 = arith.constant 6 : index
    %c0_127 = arith.constant 0 : index
    %240 = memref.load %arg4[%c6_126, %c0_127] : memref<8x4xf32, #tpu.memory_space<smem>>
    %241 = vector.broadcast %240 : f32 to vector<2x128xf32>
    %242 = arith.mulf %239, %241 : vector<2x128xf32>
    %243 = arith.addf %207, %242 : vector<2x128xf32>
    %c6_128 = arith.constant 6 : index
    %c1_129 = arith.constant 1 : index
    %244 = memref.load %arg4[%c6_128, %c1_129] : memref<8x4xf32, #tpu.memory_space<smem>>
    %245 = vector.broadcast %244 : f32 to vector<2x128xf32>
    %246 = arith.mulf %239, %245 : vector<2x128xf32>
    %247 = arith.addf %211, %246 : vector<2x128xf32>
    %c6_130 = arith.constant 6 : index
    %c2_131 = arith.constant 2 : index
    %248 = memref.load %arg4[%c6_130, %c2_131] : memref<8x4xf32, #tpu.memory_space<smem>>
    %249 = vector.broadcast %248 : f32 to vector<2x128xf32>
    %250 = arith.mulf %239, %249 : vector<2x128xf32>
    %251 = arith.addf %215, %250 : vector<2x128xf32>
    %c6_132 = arith.constant 6 : index
    %c3_133 = arith.constant 3 : index
    %252 = memref.load %arg4[%c6_132, %c3_133] : memref<8x4xf32, #tpu.memory_space<smem>>
    %253 = vector.broadcast %252 : f32 to vector<2x128xf32>
    %254 = arith.mulf %239, %253 : vector<2x128xf32>
    %255 = arith.addf %219, %254 : vector<2x128xf32>
    %c0_134 = arith.constant 0 : index
    %c7 = arith.constant 7 : index
    %256 = memref.load %arg2[%c0_134, %c7] : memref<4x8xf32, #tpu.memory_space<smem>>
    %257 = vector.broadcast %256 : f32 to vector<2x128xf32>
    %258 = arith.mulf %1, %257 : vector<2x128xf32>
    %c1_135 = arith.constant 1 : index
    %c7_136 = arith.constant 7 : index
    %259 = memref.load %arg2[%c1_135, %c7_136] : memref<4x8xf32, #tpu.memory_space<smem>>
    %260 = vector.broadcast %259 : f32 to vector<2x128xf32>
    %261 = arith.mulf %3, %260 : vector<2x128xf32>
    %262 = arith.addf %258, %261 : vector<2x128xf32>
    %c2_137 = arith.constant 2 : index
    %c7_138 = arith.constant 7 : index
    %263 = memref.load %arg2[%c2_137, %c7_138] : memref<4x8xf32, #tpu.memory_space<smem>>
    %264 = vector.broadcast %263 : f32 to vector<2x128xf32>
    %265 = arith.mulf %5, %264 : vector<2x128xf32>
    %266 = arith.addf %262, %265 : vector<2x128xf32>
    %c3_139 = arith.constant 3 : index
    %c7_140 = arith.constant 7 : index
    %267 = memref.load %arg2[%c3_139, %c7_140] : memref<4x8xf32, #tpu.memory_space<smem>>
    %268 = vector.broadcast %267 : f32 to vector<2x128xf32>
    %269 = arith.mulf %7, %268 : vector<2x128xf32>
    %270 = arith.addf %266, %269 : vector<2x128xf32>
    %c7_141 = arith.constant 7 : index
    %271 = memref.load %arg3[%c7_141] : memref<8xf32, #tpu.memory_space<smem>>
    %272 = vector.broadcast %271 : f32 to vector<2x128xf32>
    %273 = arith.addf %270, %272 : vector<2x128xf32>
    %cst_142 = arith.constant 0.000000e+00 : f32
    %274 = vector.broadcast %cst_142 : f32 to vector<2x128xf32>
    %275 = arith.maximumf %273, %274 : vector<2x128xf32>
    %c7_143 = arith.constant 7 : index
    %c0_144 = arith.constant 0 : index
    %276 = memref.load %arg4[%c7_143, %c0_144] : memref<8x4xf32, #tpu.memory_space<smem>>
    %277 = vector.broadcast %276 : f32 to vector<2x128xf32>
    %278 = arith.mulf %275, %277 : vector<2x128xf32>
    %279 = arith.addf %243, %278 : vector<2x128xf32>
    %c7_145 = arith.constant 7 : index
    %c1_146 = arith.constant 1 : index
    %280 = memref.load %arg4[%c7_145, %c1_146] : memref<8x4xf32, #tpu.memory_space<smem>>
    %281 = vector.broadcast %280 : f32 to vector<2x128xf32>
    %282 = arith.mulf %275, %281 : vector<2x128xf32>
    %283 = arith.addf %247, %282 : vector<2x128xf32>
    %c7_147 = arith.constant 7 : index
    %c2_148 = arith.constant 2 : index
    %284 = memref.load %arg4[%c7_147, %c2_148] : memref<8x4xf32, #tpu.memory_space<smem>>
    %285 = vector.broadcast %284 : f32 to vector<2x128xf32>
    %286 = arith.mulf %275, %285 : vector<2x128xf32>
    %287 = arith.addf %251, %286 : vector<2x128xf32>
    %c7_149 = arith.constant 7 : index
    %c3_150 = arith.constant 3 : index
    %288 = memref.load %arg4[%c7_149, %c3_150] : memref<8x4xf32, #tpu.memory_space<smem>>
    %289 = vector.broadcast %288 : f32 to vector<2x128xf32>
    %290 = arith.mulf %275, %289 : vector<2x128xf32>
    %291 = arith.addf %255, %290 : vector<2x128xf32>
    %c0_151 = arith.constant 0 : index
    %292 = memref.load %arg5[%c0_151] : memref<4xf32, #tpu.memory_space<smem>>
    %293 = vector.broadcast %292 : f32 to vector<2x128xf32>
    %294 = arith.addf %279, %293 : vector<2x128xf32>
    %c0_152 = arith.constant 0 : index
    %c0_153 = arith.constant 0 : index
    %c0_154 = arith.constant 0 : index
    %c0_155 = arith.constant 0 : index
    %295 = vector.load %arg7[%c0_152, %c0_153, %c0_154, %c0_155] : memref<1x4x2x128xf32, #tpu.memory_space<vmem>>, vector<1x1x2x128xf32>
    %296 = vector.shape_cast %295 : vector<1x1x2x128xf32> to vector<2x128xf32>
    %297 = vector.shape_cast %294 : vector<2x128xf32> to vector<1x1x2x128xf32>
    tpu.vector_store %arg7[%c0_152, %c0_153, %c0_154, %c0_155], %297 {strides = array<i32>} : memref<1x4x2x128xf32, #tpu.memory_space<vmem>>, vector<1x1x2x128xf32>,
    %c1_156 = arith.constant 1 : index
    %298 = memref.load %arg5[%c1_156] : memref<4xf32, #tpu.memory_space<smem>>
    %299 = vector.broadcast %298 : f32 to vector<2x128xf32>
    %300 = arith.addf %283, %299 : vector<2x128xf32>
    %c0_157 = arith.constant 0 : index
    %c1_158 = arith.constant 1 : index
    %c0_159 = arith.constant 0 : index
    %c0_160 = arith.constant 0 : index
    %301 = vector.load %arg7[%c0_157, %c1_158, %c0_159, %c0_160] : memref<1x4x2x128xf32, #tpu.memory_space<vmem>>, vector<1x1x2x128xf32>
    %302 = vector.shape_cast %301 : vector<1x1x2x128xf32> to vector<2x128xf32>
    %303 = vector.shape_cast %300 : vector<2x128xf32> to vector<1x1x2x128xf32>
    tpu.vector_store %arg7[%c0_157, %c1_158, %c0_159, %c0_160], %303 {strides = array<i32>} : memref<1x4x2x128xf32, #tpu.memory_space<vmem>>, vector<1x1x2x128xf32>,
    %c2_161 = arith.constant 2 : index
    %304 = memref.load %arg5[%c2_161] : memref<4xf32, #tpu.memory_space<smem>>
    %305 = vector.broadcast %304 : f32 to vector<2x128xf32>
    %306 = arith.addf %287, %305 : vector<2x128xf32>
    %c0_162 = arith.constant 0 : index
    %c2_163 = arith.constant 2 : index
    %c0_164 = arith.constant 0 : index
    %c0_165 = arith.constant 0 : index
    %307 = vector.load %arg7[%c0_162, %c2_163, %c0_164, %c0_165] : memref<1x4x2x128xf32, #tpu.memory_space<vmem>>, vector<1x1x2x128xf32>
    %308 = vector.shape_cast %307 : vector<1x1x2x128xf32> to vector<2x128xf32>
    %309 = vector.shape_cast %306 : vector<2x128xf32> to vector<1x1x2x128xf32>
    tpu.vector_store %arg7[%c0_162, %c2_163, %c0_164, %c0_165], %309 {strides = array<i32>} : memref<1x4x2x128xf32, #tpu.memory_space<vmem>>, vector<1x1x2x128xf32>,
    %c3_166 = arith.constant 3 : index
    %310 = memref.load %arg5[%c3_166] : memref<4xf32, #tpu.memory_space<smem>>
    %311 = vector.broadcast %310 : f32 to vector<2x128xf32>
    %312 = arith.addf %291, %311 : vector<2x128xf32>
    %c0_167 = arith.constant 0 : index
    %c3_168 = arith.constant 3 : index
    %c0_169 = arith.constant 0 : index
    %c0_170 = arith.constant 0 : index
    %313 = vector.load %arg7[%c0_167, %c3_168, %c0_169, %c0_170] : memref<1x4x2x128xf32, #tpu.memory_space<vmem>>, vector<1x1x2x128xf32>
    %314 = vector.shape_cast %313 : vector<1x1x2x128xf32> to vector<2x128xf32>
    %315 = vector.shape_cast %312 : vector<2x128xf32> to vector<1x1x2x128xf32>
    tpu.vector_store %arg7[%c0_167, %c3_168, %c0_169, %c0_170], %315 {strides = array<i32>} : memref<1x4x2x128xf32, #tpu.memory_space<vmem>>, vector<1x1x2x128xf32>,
    return
  }
  func.func @transform_0(%arg0: i32, %arg1: i32) -> (i32, i32) {
    %c0_i32 = arith.constant 0 : i32
    %c0_i32_0 = arith.constant 0 : i32
    %c0_i32_1 = arith.constant 0 : i32
    return %c0_i32, %c0_i32_0 : i32, i32
  }
  func.func @transform_1(%arg0: i32, %arg1: i32) -> i32 {
    %c0_i32 = arith.constant 0 : i32
    %c0_i32_0 = arith.constant 0 : i32
    return %c0_i32 : i32
  }
  func.func @transform_2(%arg0: i32, %arg1: i32) -> (i32, i32) {
    %c0_i32 = arith.constant 0 : i32
    %c0_i32_0 = arith.constant 0 : i32
    %c0_i32_1 = arith.constant 0 : i32
    return %c0_i32, %c0_i32_0 : i32, i32
  }
  func.func @transform_3(%arg0: i32, %arg1: i32) -> i32 {
    %c0_i32 = arith.constant 0 : i32
    %c0_i32_0 = arith.constant 0 : i32
    return %c0_i32 : i32
  }
  func.func @transform_4(%arg0: i32, %arg1: i32) -> (i32, i32, i32, i32) {
    %c0_i32 = arith.constant 0 : i32
    %c0_i32_0 = arith.constant 0 : i32
    %c0_i32_1 = arith.constant 0 : i32
    return %arg0, %c0_i32, %arg1, %c0_i32_0 : i32, i32, i32, i32
  }
  func.func @transform_5(%arg0: i32, %arg1: i32) -> (i32, i32, i32, i32) {
    %c0_i32 = arith.constant 0 : i32
    %c0_i32_0 = arith.constant 0 : i32
    %c0_i32_1 = arith.constant 0 : i32
    return %arg0, %c0_i32, %arg1, %c0_i32_0 : i32, i32, i32, i32
  }
}

</mosaic_0001>

<bundles_post_ra>
// kernel: tpu_custom_call.1
= control target key start
LH: loop header
LB: loop body
LE: loop exit
PB: predicated region body
PF: predicated region fallthrough
CT: control target
= control target key end

     0   :  { %s1538_s0 = inlined_call_operand.vmem [shape: f32[4,8], index: 0, kind: input, shape index: {}]   ;;  %s1539_s1 = inlined_call_operand.vmem [shape: f32[8], index: 1, kind: input, shape index: {}]   ;;  %s1540_s2 = inlined_call_operand.vmem [shape: f32[8,4], index: 2, kind: input, shape index: {}]   ;;  %s1541_s3 = inlined_call_operand.vmem [shape: f32[4], index: 3, kind: input, shape index: {}]   ;;  %s1542_s4 = inlined_call_operand.hbm [shape: f32[2,4,2,128], index: 4, kind: input, shape index: {}]   ;;  %s1543_s5 = inlined_call_operand.hbm [shape: f32[2,4,2,128], index: 5, kind: output, shape index: {}]  }
   0x1   :  { %1544 = sst [smem:[#allocation18_spill]] %s1538_s0 }
   0x2   :  { %1545 = sst [smem:[#allocation19_spill]] %s1539_s1 }
   0x3   :  { %1546 = sst [smem:[#allocation20_spill]] %s1540_s2 }
   0x4   :  { %10 = vsyncpa [#allocation5], 0 }
   0x5   :  { %11 = vsyncpa [#allocation7], 0 }
   0x6   :  { %12 = vsyncpa [#allocation10], 0 }
   0x7   :  { %13 = vsyncpa [#allocation3], 0 }
   0x8   :  { %15 = vsyncpa [#allocation3 + $0x1], 0 }
   0x9   :  { %16 = vsyncpa [#allocation4], 0 }
   0xa   :  { %18 = vsyncpa [#allocation4 + $0x1], 0  ;;  %s1193_s18 = smov 0   ;;  %s1195_s19 = smov 0  }
   0xb   :  { %s1197_s20 = smov 0   ;;  %s1199_s21 = smov 0  }
   0xc   :  { %s1201_s22 = smov 0   ;;  %s1203_s23 = smov 0  }
   0xd LB: > { %s759_s24 = sadd.s32 4294967295, %s1153_s23   ;;  %s760_s25 = sadd.s32 4294967294, %s1153_s23   ;;  %s1153_s23 = sphi %s1203_s23, %s24_s23   ;;  %s1149_s22 = sphi %s1201_s22, %s1561_s22   ;;  %s1145_s21 = sphi %s1199_s21, %s1560_s21   ;;  %s1141_s20 = sphi %s1197_s20, %s1559_s20   ;;  %s1137_s19 = sphi %s1195_s19, %s1558_s19   ;;  %s1133_s18 = sphi %s1193_s18, %s1557_s18  }
   0xe   : > { %p142_p0 = scmp.ne.s32.totalorder %s1137_s19, %s1133_s18  ;;  %p1227_p1 = scmp.eq.s32.totalorder %s759_s24, 0 }
   0xf   : > { %p1231_p2 = scmp.eq.s32.totalorder %s759_s24, 1  ;;  %p174_p3 = scmp.eq.s32.totalorder %s760_s25, 1 }
  0x10   : > { %p1237_p4 = por %p1227_p1, %p142_p0  ;;  %p761_p5 = scmp.ge.s32.totalorder %s1153_s23, 1 }
  0x11   : > { %p1242_p6 = por %p174_p3, %p142_p0  ;;  %p181_p7 = scmp.lt.s32.totalorder %s1153_s23, 3 }
  0x12   : > { %s1551_s1 = sld [smem:[#allocation19_spill]]  ;;  %p766_p9 = scmp.ge.s32.totalorder %s1153_s23, 2 }
  0x13   : > { %p1250_p8 = pnand %p761_p5, %p181_p7  ;;  %s1553_s0 = sld [smem:[#allocation18_spill]] }
  0x14   : > { %s1554_s2 = sld [smem:[#allocation20_spill]]  ;;  %s1155_s15 = smov [#allocation6]  }
  0x15   : > { %p882_p10 = pneg %p1250_p8  ;;  %s1156_s16 = smov [#allocation2]  }
  0x16   : > { %s223_s25 = sshll.u32 %s1541_s3, 4  ;;  %s1157_s30 = smov [#allocation8]   ;;  %s224_s25 = int_to_ptr.vmem [resolvable:$true] %s223_s25 }
  0x17   : > { %p883_p11 = pnand %p882_p10, %p1227_p1  ;;  %s1158_s6 = smov [#allocation9]  }
  0x18   : > { %s203_s7 = sshll.u32 %s1551_s1, 4  ;;  %s36_s9 = sadd.s32 1, %s1149_s22  ;;  %s204_s7 = int_to_ptr.vmem [resolvable:$true] %s203_s7 }
  0x19   : > { %s193_s11 = sshll.u32 %s1553_s0, 4  ;;  %s129_s10 = sadd.s32 1, %s1141_s20  ;;  %s194_s11 = int_to_ptr.vmem [resolvable:$true] %s193_s11 }
  0x1a   : > { %s213_s14 = sshll.u32 %s1554_s2, 4  ;;  %p38_p12 = scmp.ge.s32.totalorder %s36_s9, 2  ;;  %s214_s14 = int_to_ptr.vmem [resolvable:$true] %s213_s14 }
  0x1b   : > { %888 = dma.vmem_to_smem (!%p883_p11), %s204_s7, 16, %s1155_s15, [#allocation7]  }
  0x1c   : > { %885 = dma.vmem_to_smem (!%p883_p11), %s194_s11, 64, %s1156_s16, [#allocation5]  }
  0x1d   : > { %891 = dma.vmem_to_smem (!%p883_p11), %s214_s14, 128, %s1157_s30, [#allocation7]  }
  0x1e   : > { %894 = dma.vmem_to_smem (!%p883_p11), %s224_s25, 16, %s1158_s6, [#allocation10]  }
  0x1f   : > { %p136_p13 = scmp.ne.s32.totalorder %s1141_s20, %s1137_s19  ;;  %p137_p0 = scmp.eq.s32.totalorder %s1153_s23, 0 }
  0x20   : > { %p907_p3 = scmp.lt.s32.totalorder %s1153_s23, 2  ;;  %s1563_s9 = smov (%p38_p12, %s36_s9), 0 }
  0x21   : > { %p1276_p5 = por %p137_p0, %p136_p13  ;;  %p1282_p7 = por %p1231_p2, %p136_p13 }
  0x22   : > { %s124_s12 = ssub.s32 %s1149_s22, %s1563_s9  ;;  %s234_s13 = sand.u32 1, %s1141_s20  }
  0x23   : > { %p127_p10 = scmp.eq.s32.totalorder %s124_s12, 0  ;;  %s767_s14 = sshll.u32 %s234_s13, 3 }
  0x24   : > { %s860_s15 = sshll.u32 %s1149_s22, 3  ;;  %s238_s6 = scalar_lea.vmem [#allocation11], %s767_s14 }
  0x25   : > { %s1291_s16 = scalar_select %p127_p10, %s1141_s20, %s129_s10  }
  0x26   : > { %s244_s25 = scalar_lea.hbm %s1542_s4, %s860_s15  ;;  %s247_s0 = sshll.u32 %s238_s6, 4  ;;  %s248_s0 = int_to_ptr.vmem [resolvable:$true] %s247_s0 }
  0x27   : > { %s245_s30 = sshll.u32 %s244_s25, 4  ;;  %p896_p2 = pnand %p907_p3, %p1276_p5  ;;  %s246_s30 = int_to_ptr.hbm [resolvable:$true] %s245_s30 }
  0x28   : > { %s235_s27 = scalar_lea.sflag [#allocation3], %s234_s13  ;;  %s1159_s1 = smov 32  }
  0x29   : > { %s1160_s2 = smov 2   ;;  %259 = sbr.rel (%p1250_p8) target bundleno = 154 (0x9a), region = 40 }
  0x2a   : > { %898 = dma.hbm_to_vmem [thread:$0]  (!%p896_p2), %s246_s30, 128, %s248_s0, %s235_s27, %s1159_s1, %s1159_s1, %s1160_s2  }
  0x2e   : > { %1112 = dma.done.wait (%p1227_p1), [#allocation5], 64  }
  0x2f   : > { %1114 = vsyncadd (%p1227_p1), [#allocation5], 4294967232 }
  0x30   : > { %1116 = dma.done.wait (%p1227_p1), [#allocation7], 144  }
  0x31   : > { %1118 = vsyncadd (%p1227_p1), [#allocation7], 4294967152 }
  0x32   : > { %1120 = dma.done.wait (%p1227_p1), [#allocation10], 16  }
  0x33   : > { %1122 = vsyncadd (%p1227_p1), [#allocation10], 4294967280  ;;  %s1315_s0 = sand.u32 1, %s1137_s19  }
  0x34   : > { %s775_s1 = sshll.u32 %s1315_s0, 3  ;;  %s282_s2 = scalar_lea.sflag [#allocation3], %s1315_s0 }
  0x35   : > { %s285_s8 = scalar_lea.vmem [#allocation11], %s775_s1 }
  0x36   : > { %1124 = dma.done.wait (%p1237_p4), %s282_s2, 128  }
  0x37   : > { %1126 = vsyncadd (%p1237_p4), %s282_s2, 4294967168 }
  0x38   : > { %291 = sfence }
  0x39   : > { %s321_s10 = sld [smem:[#allocation2]]  ;;  %v1325_v0 = vld [vmem:[%s285_s8] sm:$0x3]  ;;  %v1329_v1 = vld [vmem:[%s285_s8 + $0x2] sm:$0x3] }
  0x3a   : > { %s780_s26 = sld [smem:[#allocation2 + $0x80]]  ;;  %v1334_v5 = vld [vmem:[%s285_s8 + $0x4] sm:$0x3]  ;;  %v1342_v10 = vld [vmem:[%s285_s8 + $0x6] sm:$0x3] }
  0x3b   : > { %s781_s7 = sld [smem:[#allocation2 + $0x100]] }
  0x3c   : > { %s782_s12 = sld [smem:[#allocation2 + $0x180]] }
  0x3d   : > { %s1327_s13 = sld [smem:[#allocation6]] }
  0x3e   : > { %s1331_s14 = sld [smem:[#allocation8]] }
  0x3f   : > { %v322_v2 = vstv %s321_s10  ;;  %s786_s15 = sld [smem:[#allocation2 + $0x1]] }
  0x40   : > { %v323_v3 = vmul.f32 %v322_v2, %v1325_v0  ;;  %v325_v4 = vstv %s780_s26  ;;  %s787_s28 = sld [smem:[#allocation2 + $0x81]] }
  0x41   : > { %v326_v6 = vmul.f32 %v1329_v1, %v325_v4  ;;  %v329_v7 = vstv %s781_s7  ;;  %s788_s17 = sld [smem:[#allocation2 + $0x101]] }
  0x42   : > { %s789_s24 = sld [smem:[#allocation2 + $0x181]]  ;;  %v330_v9 = vmul.f32 %v1334_v5, %v329_v7  ;;  %v333_v11 = vstv %s782_s12 }
  0x43   : > { %s1337_s25 = sld [smem:[#allocation6 + $0x1]]  ;;  %v327_v8 = vadd.f32 %v326_v6, %v323_v3  ;;  %v334_v18 = vmul.f32 %v1342_v10, %v333_v11  ;;  %v337_v28 = vstv %s1327_s13 }
  0x44   : > { %s1340_s30 = sld [smem:[#allocation8 + $0x80]]  ;;  %v341_v50 = vstv %s1331_s14 }
  0x45   : > { %v353_v12 = vstv %s786_s15  ;;  %s795_s6 = sld [smem:[#allocation2 + $0x2]]  ;;  %v331_v17 = vadd.f32 %v330_v9, %v327_v8 }
  0x46   : > { %v354_v13 = vmul.f32 %v353_v12, %v1325_v0  ;;  %v356_v14 = vstv %s787_s28  ;;  %s796_s27 = sld [smem:[#allocation2 + $0x82]] }
  0x47   : > { %v357_v15 = vmul.f32 %v1329_v1, %v356_v14  ;;  %v360_v16 = vstv %s788_s17  ;;  %s797_s2 = sld [smem:[#allocation2 + $0x102]]  ;;  %v335_v25 = vadd.f32 %v334_v18, %v331_v17 }
  0x48   : > { %v361_v19 = vmul.f32 %v1334_v5, %v360_v16  ;;  %v364_v20 = vstv %s789_s24  ;;  %s798_s8 = sld [smem:[#allocation2 + $0x182]] }
  0x49   : > { %v358_v21 = vadd.f32 %v357_v15, %v354_v13  ;;  %v365_v22 = vmul.f32 %v1342_v10, %v364_v20  ;;  %s1349_s10 = sld [smem:[#allocation6 + $0x2]]  ;;  %v368_v32 = vstv %s1337_s25  ;;  %v338_v37 = vadd.f32 %v337_v28, %v335_v25 }
  0x4a   : > { %s1351_s26 = sld [smem:[#allocation8 + $0x100]]  ;;  %v372_v54 = vstv %s1340_s30 }
  0x4b   : > { %v362_v23 = vadd.f32 %v361_v19, %v358_v21  ;;  %v388_v24 = vstv %s795_s6  ;;  %s804_s7 = sld [smem:[#allocation2 + $0x3]]  ;;  %v1366_v47 = vmax.f32 %v338_v37, 0.0 }
  0x4c   : > { %v389_v26 = vmul.f32 %v388_v24, %v1325_v0  ;;  %v391_v27 = vstv %s796_s27  ;;  %s805_s12 = sld [smem:[#allocation2 + $0x83]] }
  0x4d   : > { %v366_v29 = vadd.f32 %v365_v22, %v362_v23  ;;  %v392_v30 = vmul.f32 %v1329_v1, %v391_v27  ;;  %v395_v31 = vstv %s797_s2  ;;  %s806_s15 = sld [smem:[#allocation2 + $0x103]]  ;;  %v342_v58 = vmul.f32 %v341_v50, %v1366_v47 }
  0x4e   : > { %v396_v33 = vmul.f32 %v1334_v5, %v395_v31  ;;  %v399_v34 = vstv %s798_s8  ;;  %s807_s28 = sld [smem:[#allocation2 + $0x183]] }
  0x4f   : > { %v393_v35 = vadd.f32 %v392_v30, %v389_v26  ;;  %v400_v36 = vmul.f32 %v1342_v10, %v399_v34  ;;  %s1359_s17 = sld [smem:[#allocation6 + $0x3]]  ;;  %v369_v38 = vadd.f32 %v368_v32, %v366_v29  ;;  %v403_v44 = vstv %s1349_s10 }
  0x50   : > { %s1361_s24 = sld [smem:[#allocation8 + $0x180]]  ;;  %v407_v8 = vstv %s1351_s26 }
  0x51   : > { %v397_v39 = vadd.f32 %v396_v33, %v393_v35  ;;  %v423_v40 = vstv %s804_s7  ;;  %s813_s13 = sld [smem:[#allocation2 + $0x4]]  ;;  %v1370_v51 = vmax.f32 %v369_v38, 0.0 }
  0x52   : > { %v424_v41 = vmul.f32 %v423_v40, %v1325_v0  ;;  %v426_v42 = vstv %s805_s12  ;;  %s814_s25 = sld [smem:[#allocation2 + $0x84]] }
  0x53   : > { %v401_v43 = vadd.f32 %v400_v36, %v397_v39  ;;  %v427_v45 = vmul.f32 %v1329_v1, %v426_v42  ;;  %v430_v46 = vstv %s806_s15  ;;  %s815_s6 = sld [smem:[#allocation2 + $0x104]]  ;;  %v373_v62 = vmul.f32 %v372_v54, %v1370_v51 }
  0x54   : > { %v431_v48 = vmul.f32 %v1334_v5, %v430_v46  ;;  %v434_v49 = vstv %s807_s28  ;;  %s816_s27 = sld [smem:[#allocation2 + $0x184]] }
  0x55   : > { %v428_v52 = vadd.f32 %v427_v45, %v424_v41  ;;  %v435_v53 = vmul.f32 %v1342_v10, %v434_v49  ;;  %s1373_s2 = sld [smem:[#allocation6 + $0x4]]  ;;  %v404_v55 = vadd.f32 %v403_v44, %v401_v43  ;;  %v438_v59 = vstv %s1359_s17 }
  0x56   : > { %s1376_s8 = sld [smem:[#allocation8 + $0x200]]  ;;  %v374_v13 = vadd.f32 %v373_v62, %v342_v58  ;;  %v442_v24 = vstv %s1361_s24 }
  0x57   : > { %v432_v56 = vadd.f32 %v431_v48, %v428_v52  ;;  %v458_v57 = vstv %s813_s13  ;;  %s822_s10 = sld [smem:[#allocation2 + $0x5]]  ;;  %v1383_v4 = vmax.f32 %v404_v55, 0.0 }
  0x58   : > { %v459_v60 = vmul.f32 %v458_v57, %v1325_v0  ;;  %v461_v61 = vstv %s814_s25  ;;  %s823_s14 = sld [smem:[#allocation2 + $0x85]] }
  0x59   : > { %v436_v63 = vadd.f32 %v435_v53, %v432_v56  ;;  %v462_v2 = vmul.f32 %v1329_v1, %v461_v61  ;;  %v465_v3 = vstv %s815_s6  ;;  %s824_s30 = sld [smem:[#allocation2 + $0x105]]  ;;  %v408_v16 = vmul.f32 %v407_v8, %v1383_v4 }
  0x5a   : > { %v466_v6 = vmul.f32 %v1334_v5, %v465_v3  ;;  %v469_v7 = vstv %s816_s27  ;;  %s825_s7 = sld [smem:[#allocation2 + $0x185]] }
  0x5b   : > { %v439_v9 = vadd.f32 %v438_v59, %v436_v63  ;;  %v463_v11 = vadd.f32 %v462_v2, %v459_v60  ;;  %v470_v12 = vmul.f32 %v1342_v10, %v469_v7  ;;  %s1388_s12 = sld [smem:[#allocation6 + $0x5]]  ;;  %v473_v17 = vstv %s1373_s2 }
  0x5c   : > { %s1390_s15 = sld [smem:[#allocation8 + $0x280]]  ;;  %v409_v30 = vadd.f32 %v408_v16, %v374_v13  ;;  %v477_v38 = vstv %s1376_s8 }
  0x5d   : > { %v467_v14 = vadd.f32 %v466_v6, %v463_v11  ;;  %v493_v15 = vstv %s822_s10  ;;  %s831_s28 = sld [smem:[#allocation2 + $0x6]]  ;;  %v1395_v20 = vmax.f32 %v439_v9, 0.0 }
  0x5e   : > { %v494_v18 = vmul.f32 %v493_v15, %v1325_v0  ;;  %v496_v19 = vstv %s823_s14  ;;  %s832_s26 = sld [smem:[#allocation2 + $0x86]] }
  0x5f   : > { %v471_v21 = vadd.f32 %v470_v12, %v467_v14  ;;  %v497_v22 = vmul.f32 %v1329_v1, %v496_v19  ;;  %v500_v23 = vstv %s824_s30  ;;  %s833_s17 = sld [smem:[#allocation2 + $0x106]]  ;;  %v443_v31 = vmul.f32 %v442_v24, %v1395_v20 }
  0x60   : > { %v501_v25 = vmul.f32 %v1334_v5, %v500_v23  ;;  %v504_v26 = vstv %s825_s7  ;;  %s834_s13 = sld [smem:[#allocation2 + $0x186]] }
  0x61   : > { %v474_v27 = vadd.f32 %v473_v17, %v471_v21  ;;  %v498_v28 = vadd.f32 %v497_v22, %v494_v18  ;;  %v505_v29 = vmul.f32 %v1342_v10, %v504_v26  ;;  %s1401_s25 = sld [smem:[#allocation6 + $0x6]]  ;;  %v508_v35 = vstv %s1388_s12 }
  0x62   : > { %s1403_s6 = sld [smem:[#allocation8 + $0x300]]  ;;  %v444_v48 = vadd.f32 %v443_v31, %v409_v30  ;;  %v512_v52 = vstv %s1390_s15 }
  0x63   : > { %v502_v32 = vadd.f32 %v501_v25, %v498_v28  ;;  %v528_v33 = vstv %s831_s28  ;;  %s840_s27 = sld [smem:[#allocation2 + $0x7]]  ;;  %v1406_v34 = vmax.f32 %v474_v27, 0.0 }
  0x64   : > { %v529_v36 = vmul.f32 %v528_v33, %v1325_v0  ;;  %v531_v37 = vstv %s832_s26  ;;  %s841_s24 = sld [smem:[#allocation2 + $0x87]] }
  0x65   : > { %v506_v39 = vadd.f32 %v505_v29, %v502_v32  ;;  %v532_v40 = vmul.f32 %v1329_v1, %v531_v37  ;;  %v535_v41 = vstv %s833_s17  ;;  %s842_s2 = sld [smem:[#allocation2 + $0x107]]  ;;  %v478_v49 = vmul.f32 %v477_v38, %v1406_v34 }
  0x66   : > { %v536_v42 = vmul.f32 %v1334_v5, %v535_v41  ;;  %v539_v43 = vstv %s834_s13  ;;  %s843_s10 = sld [smem:[#allocation2 + $0x187]] }
  0x67   : > { %v509_v44 = vadd.f32 %v508_v35, %v506_v39  ;;  %v533_v45 = vadd.f32 %v532_v40, %v529_v36  ;;  %v540_v46 = vmul.f32 %v1342_v10, %v539_v43  ;;  %s1414_s14 = sld [smem:[#allocation6 + $0x7]]  ;;  %v543_v55 = vstv %s1401_s25 }
  0x68   : > { %s1417_s8 = sld [smem:[#allocation8 + $0x380]]  ;;  %v479_v61 = vadd.f32 %v478_v49, %v444_v48  ;;  %v547_v7 = vstv %s1403_s6 }
  0x69   : > { %v1419_v50 = vmax.f32 %v509_v44, 0.0  ;;  %v537_v53 = vadd.f32 %v536_v42, %v533_v45  ;;  %v563_v54 = vstv %s840_s27  ;;  %s1422_s30 = sld [smem:[#allocation9]] }
  0x6a   : > { %v564_v56 = vmul.f32 %v563_v54, %v1325_v0  ;;  %v566_v57 = vstv %s841_s24  ;;  %s783_s7 = sld [smem:[#allocation8 + $0x1]] }
  0x6b   : > { %v541_v58 = vadd.f32 %v540_v46, %v537_v53  ;;  %v567_v59 = vmul.f32 %v1329_v1, %v566_v57  ;;  %v570_v60 = vstv %s842_s2  ;;  %s792_s12 = sld [smem:[#allocation8 + $0x81]]  ;;  %v513_v62 = vmul.f32 %v512_v52, %v1419_v50 }
  0x6c   : > { %v571_v63 = vmul.f32 %v1334_v5, %v570_v60  ;;  %v574_v2 = vstv %s843_s10  ;;  %s801_s15 = sld [smem:[#allocation8 + $0x101]] }
  0x6d   : > { %v544_v3 = vadd.f32 %v543_v55, %v541_v58  ;;  %v568_v6 = vadd.f32 %v567_v59, %v564_v56  ;;  %v575_v0 = vmul.f32 %v1342_v10, %v574_v2  ;;  %s810_s28 = sld [smem:[#allocation8 + $0x181]]  ;;  %v514_v9 = vadd.f32 %v513_v62, %v479_v61 }
  0x6e   : > { %s819_s26 = sld [smem:[#allocation8 + $0x201]]  ;;  %v578_v11 = vstv %s1414_s14  ;;  %v582_v21 = vstv %s1417_s8 }
  0x6f   : > { %v1431_v8 = vmax.f32 %v544_v3, 0.0  ;;  %v572_v1 = vadd.f32 %v571_v63, %v568_v6  ;;  %s1433_s17 = sld [smem:[#allocation8 + $0x281]]  ;;  %v598_v32 = vstv %s1422_s30 }
  0x70   : > { %v344_v12 = vstv %s783_s7  ;;  %s1436_s13 = sld [smem:[#allocation8 + $0x301]] }
  0x71   : > { %v548_v5 = vmul.f32 %v547_v7, %v1431_v8  ;;  %v576_v13 = vadd.f32 %v575_v0, %v572_v1  ;;  %v345_v14 = vmul.f32 %v344_v12, %v1366_v47  ;;  %v376_v10 = vstv %s792_s12  ;;  %s1440_s25 = sld [smem:[#allocation8 + $0x381]] }
  0x72   : > { %v377_v15 = vmul.f32 %v376_v10, %v1370_v51  ;;  %v411_v16 = vstv %s801_s15  ;;  %s1443_s6 = sld [smem:[#allocation9 + $0x1]] }
  0x73   : > { %v579_v17 = vadd.f32 %v578_v11, %v576_v13  ;;  %v412_v18 = vmul.f32 %v411_v16, %v1383_v4  ;;  %v446_v19 = vstv %s810_s28  ;;  %s784_s27 = sld [smem:[#allocation8 + $0x2]]  ;;  %v549_v25 = vadd.f32 %v548_v5, %v514_v9  ;;  %s1474_s28 = scalar_lea.vmem [#allocation12], %s775_s1 }
  0x74   : > { %v378_v22 = vadd.f32 %v377_v15, %v345_v14  ;;  %v447_v23 = vmul.f32 %v446_v19, %v1395_v20  ;;  %v481_v24 = vstv %s819_s26  ;;  %s793_s24 = sld [smem:[#allocation8 + $0x82]] }
  0x75   : > { %v1448_v26 = vmax.f32 %v579_v17, 0.0  ;;  %v516_v27 = vstv %s1433_s17  ;;  %s802_s2 = sld [smem:[#allocation8 + $0x102]]  ;;  %v482_v29 = vmul.f32 %v481_v24, %v1406_v34 }
  0x76   : > { %v413_v28 = vadd.f32 %v412_v18, %v378_v22  ;;  %s811_s10 = sld [smem:[#allocation8 + $0x182]]  ;;  %v551_v31 = vstv %s1436_s13  ;;  %v517_v35 = vmul.f32 %v516_v27, %v1419_v50 }
  0x77   : > { %v583_v30 = vmul.f32 %v582_v21, %v1448_v26  ;;  %s1454_s14 = sld [smem:[#allocation8 + $0x202]]  ;;  %v586_v37 = vstv %s1440_s25  ;;  %v552_v40 = vmul.f32 %v551_v31, %v1431_v8 }
  0x78   : > { %v448_v33 = vadd.f32 %v447_v23, %v413_v28  ;;  %s1458_s8 = sld [smem:[#allocation8 + $0x282]]  ;;  %v587_v48 = vmul.f32 %v586_v37, %v1448_v26  ;;  %v602_v58 = vstv %s1443_s6 }
  0x79   : > { %v584_v36 = vadd.f32 %v583_v30, %v549_v25  ;;  %v347_v38 = vstv %s784_s27  ;;  %s1461_s7 = sld [smem:[#allocation8 + $0x302]] }
  0x7a   : > { %v483_v39 = vadd.f32 %v482_v29, %v448_v33  ;;  %v348_v41 = vmul.f32 %v347_v38, %v1366_v47  ;;  %v380_v42 = vstv %s793_s24  ;;  %s1465_s12 = sld [smem:[#allocation8 + $0x382]] }
  0x7b   : > { %v599_v43 = vadd.f32 %v598_v32, %v584_v36  ;;  %v381_v44 = vmul.f32 %v380_v42, %v1370_v51  ;;  %v415_v45 = vstv %s802_s2  ;;  %s1468_s30 = sld [smem:[#allocation9 + $0x2]]  ;;  %s861_s2 = sshll.u32 %s1145_s21, 3 }
  0x7c   : > { %v518_v46 = vadd.f32 %v517_v35, %v483_v39  ;;  %v416_v49 = vmul.f32 %v415_v45, %v1383_v4  ;;  %v450_v52 = vstv %s811_s10  ;;  %s785_s15 = sld [smem:[#allocation8 + $0x3]]  ;;  %s617_s21 = scalar_lea.sflag [#allocation4], %s1315_s0 }
  0x7d   : > { %600 = vst [vmem:[%s1474_s28] sm:$0x3] %v599_v43  ;;  %v382_v53 = vadd.f32 %v381_v44, %v348_v41  ;;  %v451_v54 = vmul.f32 %v450_v52, %v1395_v20  ;;  %v485_v55 = vstv %s1454_s14  ;;  %s794_s26 = sld [smem:[#allocation8 + $0x83]] }
  0x7e   : > { %v553_v56 = vadd.f32 %v552_v40, %v518_v46  ;;  %v520_v57 = vstv %s1458_s8  ;;  %s803_s17 = sld [smem:[#allocation8 + $0x103]]  ;;  %v486_v60 = vmul.f32 %v485_v55, %v1406_v34  ;;  %s629_s8 = scalar_lea.hbm %s1543_s5, %s861_s2 }
  0x7f   : > { %v417_v59 = vadd.f32 %v416_v49, %v382_v53  ;;  %s812_s13 = sld [smem:[#allocation8 + $0x183]]  ;;  %v555_v62 = vstv %s1461_s7  ;;  %v521_v2 = vmul.f32 %v520_v57, %v1419_v50  ;;  %s630_s7 = sshll.u32 %s1474_s28, 4  ;;  %s631_s7 = int_to_ptr.vmem [resolvable:$true] %s630_s7 }
  0x80   : > { %v588_v61 = vadd.f32 %v587_v48, %v553_v56  ;;  %s821_s1 = sld [smem:[#allocation8 + $0x203]]  ;;  %v590_v6 = vstv %s1465_s12  ;;  %v556_v1 = vmul.f32 %v555_v62, %v1431_v8  ;;  %s632_s12 = sshll.u32 %s629_s8, 4  ;;  %s633_s12 = int_to_ptr.hbm [resolvable:$true] %s632_s12 }
  0x81   : > { %v452_v63 = vadd.f32 %v451_v54, %v417_v59  ;;  %s830_s25 = sld [smem:[#allocation8 + $0x283]]  ;;  %v591_v14 = vmul.f32 %v590_v6, %v1448_v26  ;;  %v607_v21 = vstv %s1468_s30  ;;  %s1073_s30 = sshra.s32 %s633_s12, 4  ;;  %s1074_s30 = int_to_ptr.hbm [resolvable:$true] %s1073_s30 }
  0x82   : > { %v603_v3 = vadd.f32 %v602_v58, %v588_v61  ;;  %v350_v0 = vstv %s785_s15  ;;  %s839_s27 = sld [smem:[#allocation8 + $0x303]]  ;;  %s1075_s15 = scalar_lea.hbm %s1074_s30, 8 }
  0x83   : > { %v487_v7 = vadd.f32 %v486_v60, %v452_v63  ;;  %v351_v9 = vmul.f32 %v350_v0, %v1366_v47  ;;  %v384_v11 = vstv %s794_s26  ;;  %s848_s6 = sld [smem:[#allocation8 + $0x383]]  ;;  %p1076_p1 = scmp.ne.s32.totalorder %s1074_s30, %s1075_s15 }
  0x84   : > { %850 = vst [vmem:[%s1474_s28 + $0x2] sm:$0x3] %v603_v3  ;;  %v385_v12 = vmul.f32 %v384_v11, %v1370_v51  ;;  %v419_v5 = vstv %s803_s17  ;;  %s853_s24 = sld [smem:[#allocation9 + $0x3]]  ;;  %p1080_p11 = scmp.lt.s32.totalorder %s1074_s30, %s1543_s5 }
  0x85   : > { %v522_v13 = vadd.f32 %v521_v2, %v487_v7  ;;  %v420_v10 = vmul.f32 %v419_v5, %v1383_v4  ;;  %v454_v15 = vstv %s812_s13  ;;  %p1077_p4 = pnand %p1076_p1, %p1282_p7  ;;  %s1079_s13 = scalar_lea.hbm %s1543_s5, 16 }
  0x86   : > { %v386_v16 = vadd.f32 %v385_v12, %v351_v9  ;;  %v455_v17 = vmul.f32 %v454_v15, %v1395_v20  ;;  %v489_v18 = vstv %s821_s1  ;;  %p1081_p12 = scmp.lt.s32.totalorder %s1079_s13, %s1075_s15 }
  0x87   : > { %v557_v19 = vadd.f32 %v556_v1, %v522_v13  ;;  %v524_v47 = vstv %s830_s25  ;;  %v490_v51 = vmul.f32 %v489_v18, %v1406_v34  ;;  %p1078_p8 = pneg %p1077_p4 }
  0x88   : > { %v421_v22 = vadd.f32 %v420_v10, %v386_v16  ;;  %v559_v24 = vstv %s839_s27  ;;  %v525_v27 = vmul.f32 %v524_v47, %v1419_v50  ;;  %p1082_p13 = por %p1081_p12, %p1080_p11 }
  0x89   : > { %v592_v23 = vadd.f32 %v591_v14, %v557_v19  ;;  %v594_v28 = vstv %s848_s6  ;;  %v560_v29 = vmul.f32 %v559_v24, %v1431_v8 }
  0x8a   : > { %v456_v25 = vadd.f32 %v455_v17, %v421_v22  ;;  %v595_v30 = vmul.f32 %v594_v28, %v1448_v26  ;;  %v612_v50 = vstv %s853_s24  ;;  %p1083_p0 = pnand %p1082_p13, %p1078_p8 }
  0x8b   : > { %v608_v4 = vadd.f32 %v607_v21, %v592_v23 }
  0x8c   : > { %v491_v20 = vadd.f32 %v490_v51, %v456_v25 }
  0x8d   : > { %852 = vst [vmem:[%s1474_s28 + $0x4] sm:$0x3] %v608_v4 }
  0x8e   : > { %v526_v34 = vadd.f32 %v525_v27, %v491_v20 }
  0x90   : > { %v561_v31 = vadd.f32 %v560_v29, %v526_v34 }
  0x92   : > { %v596_v32 = vadd.f32 %v595_v30, %v561_v31 }
  0x94   : > { %v613_v33 = vadd.f32 %v612_v50, %v596_v32 }
  0x96   : > { %854 = vst [vmem:[%s1474_s28 + $0x6] sm:$0x3] %v613_v33 }
  0x97   : > { %1086 = shalt.err (!%p1083_p0)
}
  0x98   : > { %s1161_s0 = smov 32   ;;  %s1162_s28 = smov 2  }
  0x99   : > { %880 = dma.vmem_to_hbm [thread:$0]  (%p1282_p7), %s631_s7, 128, %s633_s12, %s617_s21, %s1161_s0, %s1161_s0, %s1162_s28  }
  0x9a PF: > { %s647_s27 = sand.u32 1, %s1133_s18   ;;  %p900_p3 = pnand %p766_p9, %p1242_p6 }
  0x9b   : > { %s648_s6 = scalar_lea.sflag [#allocation4], %s647_s27 }
  0x9c   : > { %p901_p5 = pneg %p900_p3 }
  0x9e   : > { %1128 = dma.done.wait (%p901_p5), %s648_s6, 128  }
  0x9f   : > { %1130 = vsyncadd (%p901_p5), %s648_s6, 4294967168  ;;  %s24_s23 = sadd.s32 1, %s1153_s23   ;;  %s1557_s18 = smov %s1137_s19 }
  0xa0   : > { %p21_p10 = scmp.ge.s32.totalorder %s24_s23, 4   ;;  %s1558_s19 = smov %s1141_s20 }
  0xa1   : > { %s1559_s20 = smov %s1291_s16  ;;  %s1560_s21 = smov %s1149_s22 }
  0xa2   : > { %s1561_s22 = smov %s1563_s9  ;;  %23 = sbr.rel (!%p21_p10) target bundleno = 13 (0xd), region = 108 }
  0xa7   :  { %654 = vsyncpa [#allocation3], 1 }
  0xa8   :  { %656 = vsyncpa [#allocation3 + $0x1], 1 }
  0xa9   :  { %657 = vsyncpa [#allocation4], 1 }
  0xaa   :  { %659 = vsyncpa [#allocation4 + $0x1], 1 }
  0xab   :  { %660 = vsyncpa [#allocation5], 1 }
  0xac   :  { %662 = vsyncpa [#allocation5 + $0x1], 1 }
  0xad   :  { %663 = vsyncpa [#allocation7], 1 }
  0xae   :  { %664 = vsyncpa [#allocation10], 1 }

</bundles_post_ra>
